<compile_context>
chip_gen: v7x
topology: tpu7x:2x2x1
jax: 0.10.0
libtpu: 0.0.40
codegen_flags: <defaults>
</compile_context>

<pallas_src>
import functools

import jax
import jax.numpy as jnp
from jax.experimental import pallas as pl
from jax.experimental.pallas import tpu as pltpu


def _residual_block_kernel(x_ref, w1_ref, g1_ref, be1_ref,
                           w2_ref, g2_ref, be2_ref, grp_ref,
                           out_ref, *, nhw, eps):
    N, H, WC = x_ref.shape
    NH = N * H
    inv_m = 1.0 / nhw

    x3 = x_ref[...]                                   # (N, H, W*C)  lane-dense
    grp = grp_ref[...]                                # (W*C, W*C)   channel grouping

    def conv3x3(h3, wband):
        # Vertical taps: row above / row below; zero rows give the H padding,
        # and per-image boundaries come for free because axis 1 is H.
        z = jnp.zeros((N, 1, WC), jnp.float32)
        up = jnp.concatenate([z, h3[:, :H - 1, :]], axis=1)   # row h-1
        dn = jnp.concatenate([h3[:, 1:, :], z], axis=1)       # row h+1
        patch = jnp.concatenate([up, h3, dn], axis=-1)        # (N, H, 3*W*C)
        patch = patch.reshape(NH, 3 * WC)
        # Single MXU matmul (K = 3*W*C); kw taps + horizontal padding are
        # encoded in the banded weight matrix.
        return jnp.dot(patch, wband, preferred_element_type=jnp.float32)

    def batchnorm(y, gamma, beta):
        # Single-pass stats: y @ grp sums all lanes belonging to the same
        # channel and replicates the result back across the folded lane axis;
        # the row-sum finishes the reduction over N and H.
        s1 = jnp.sum(jnp.dot(y, grp, preferred_element_type=jnp.float32),
                     axis=0, keepdims=True) * inv_m            # E[x]    (1, W*C)
        s2 = jnp.sum(jnp.dot(y * y, grp, preferred_element_type=jnp.float32),
                     axis=0, keepdims=True) * inv_m            # E[x^2]  (1, W*C)
        var = s2 - s1 * s1
        return (y - s1) * jax.lax.rsqrt(var + eps) * gamma + beta

    # conv1 -> BN1 -> ReLU
    h1 = conv3x3(x3, w1_ref[...])                              # (N*H, W*C)
    h1 = jnp.maximum(batchnorm(h1, g1_ref[...], be1_ref[...]), 0.0)

    # conv2 -> BN2 -> +identity -> ReLU
    h2 = conv3x3(h1.reshape(N, H, WC), w2_ref[...])
    h2 = batchnorm(h2, g2_ref[...], be2_ref[...])
    out_ref[...] = jnp.maximum(h2 + x3.reshape(NH, WC), 0.0)


def _band_weight(w_oihw, width):
    """Torch (Cout,Cin,3,3) conv weight -> (3*W*Cin, W*Cout) banded matrix.

    Wband[(kh*W + wi)*Cin + ci, wo*Cout + co] = w[kh, wi-wo+1, ci, co] when
    |wi - wo| <= 1, else 0 (which also implements padding=1 along W).
    """
    w = jnp.transpose(w_oihw, (2, 3, 1, 0)).astype(jnp.float32)   # (kh,kw,ci,co)
    _, _, cin, cout = w.shape
    wi = jnp.arange(width)[:, None]
    wo = jnp.arange(width)[None, :]
    kw = wi - wo + 1                                              # (W, W)
    valid = (kw >= 0) & (kw <= 2)
    wk = w[:, jnp.clip(kw, 0, 2)]                                 # (3,W,W,Cin,Cout)
    wk = jnp.where(valid[None, :, :, None, None], wk, 0.0)
    wk = jnp.transpose(wk, (0, 1, 3, 2, 4))                       # (kh,wi,ci,wo,co)
    return wk.reshape(3 * width * cin, width * cout)


def residual_block(x_nchw, params, *, eps=1e-5):
    """Forward pass of ResidualBlock. Input/output are NCHW like PyTorch."""
    w1, b1, g1, be1, w2, b2, g2, be2 = params
    del b1, b2  # exactly cancelled by training-mode BN mean subtraction
    assert w1.shape[0] == w1.shape[1], "residual add requires in_ch == out_ch"

    x = jnp.transpose(x_nchw, (0, 2, 3, 1)).astype(jnp.float32)   # NCHW -> NHWC
    N, H, W, C = x.shape
    WC = W * C                     # best efficiency when W*C is a multiple of 128
    x_fold = x.reshape(N, H, WC)

    w1b = _band_weight(w1, W)                                     # (3*W*C, W*C)
    w2b = _band_weight(w2, W)

    fold = lambda v: jnp.tile(v.astype(jnp.float32), W).reshape(1, WC)
    # grp[a, b] = 1 iff lanes a and b hold the same channel (a % C == b % C).
    lane = jnp.arange(WC)
    grp = (lane[:, None] % C == lane[None, :] % C).astype(jnp.float32)

    kernel = functools.partial(_residual_block_kernel, nhw=N * H * W, eps=eps)
    out_fold = pl.pallas_call(
        kernel,
        out_shape=jax.ShapeDtypeStruct((N * H, WC), jnp.float32),
        in_specs=[pl.BlockSpec(memory_space=pltpu.MemorySpace.VMEM)] * 8,
        out_specs=pl.BlockSpec(memory_space=pltpu.MemorySpace.VMEM),
    )(x_fold, w1b, fold(g1), fold(be1), w2b, fold(g2), fold(be2), grp)

    out = out_fold.reshape(N, H, W, C)
    return jnp.transpose(out, (0, 3, 1, 2))                       # NHWC -> NCHW


def residual_block_ref(x_nchw, params, *, eps=1e-5):
    """Pure-JAX reference (matches the PyTorch module in training mode)."""
    w1, b1, g1, be1, w2, b2, g2, be2 = params
    x = jnp.transpose(x_nchw, (0, 2, 3, 1)).astype(jnp.float32)

    def conv(h, w_oihw, b):
        w = jnp.transpose(w_oihw, (2, 3, 1, 0))
        y = jax.lax.conv_general_dilated(
            h, w, window_strides=(1, 1), padding="SAME",
            dimension_numbers=("NHWC", "HWIO", "NHWC"))
        return y + b

    def bn(y, g, be):
        m = jnp.mean(y, axis=(0, 1, 2))
        v = jnp.mean((y - m) ** 2, axis=(0, 1, 2))
        return (y - m) * jax.lax.rsqrt(v + eps) * g + be

    h = jax.nn.relu(bn(conv(x, w1, b1), g1, be1))
    h = bn(conv(h, w2, b2), g2, be2)
    out = jax.nn.relu(h + x)
    return jnp.transpose(out, (0, 3, 1, 2))


if __name__ == "__main__":
    key = jax.random.PRNGKey(0)
    N, C, H, W = 2, 8, 16, 16          # in_channels == out_channels == 8; W*C = 128
    ks = jax.random.split(key, 9)

    x = jax.random.normal(ks[0], (N, C, H, W), jnp.float32)
    fan = C * 9
    w1 = jax.random.normal(ks[1], (C, C, 3, 3), jnp.float32) / jnp.sqrt(fan)
    b1 = 0.1 * jax.random.normal(ks[2], (C,), jnp.float32)
    g1 = 1.0 + 0.1 * jax.random.normal(ks[3], (C,), jnp.float32)
    be1 = 0.1 * jax.random.normal(ks[4], (C,), jnp.float32)
    w2 = jax.random.normal(ks[5], (C, C, 3, 3), jnp.float32) / jnp.sqrt(fan)
    b2 = 0.1 * jax.random.normal(ks[6], (C,), jnp.float32)
    g2 = 1.0 + 0.1 * jax.random.normal(ks[7], (C,), jnp.float32)
    be2 = 0.1 * jax.random.normal(ks[8], (C,), jnp.float32)
    params = (w1, b1, g1, be1, w2, b2, g2, be2)

    out = jax.block_until_ready(residual_block(x, params))
    ref = residual_block_ref(x, params)

    assert out.shape == (N, C, H, W), out.shape
    max_err = float(jnp.max(jnp.abs(out - ref)))
    assert jnp.allclose(out, ref, rtol=5e-4, atol=5e-4), f"max_err={max_err}"
    print("KERNEL_OK")
</pallas_src>

<mosaic_0001>
module attributes {stable_mosaic.version = 11 : i64} {
  func.func @_residual_block_kernel(%arg0: memref<2x16x128xf32, #tpu.memory_space<vmem>>, %arg1: memref<384x128xf32, #tpu.memory_space<vmem>>, %arg2: memref<1x128xf32, #tpu.memory_space<vmem>>, %arg3: memref<1x128xf32, #tpu.memory_space<vmem>>, %arg4: memref<384x128xf32, #tpu.memory_space<vmem>>, %arg5: memref<1x128xf32, #tpu.memory_space<vmem>>, %arg6: memref<1x128xf32, #tpu.memory_space<vmem>>, %arg7: memref<128x128xf32, #tpu.memory_space<vmem>>, %arg8: memref<32x128xf32, #tpu.memory_space<vmem>>) attributes {dimension_semantics = [], scalar_prefetch = 0 : i64, scratch_operands = 0 : i64, tpu.core_type = #tpu.core_type<tc>} {
    %c0 = arith.constant 0 : index
    %c0_0 = arith.constant 0 : index
    %c0_1 = arith.constant 0 : index
    %0 = vector.load %arg0[%c0, %c0_0, %c0_1] : memref<2x16x128xf32, #tpu.memory_space<vmem>>, vector<2x16x128xf32>
    %c0_2 = arith.constant 0 : index
    %c0_3 = arith.constant 0 : index
    %1 = vector.load %arg7[%c0_2, %c0_3] : memref<128x128xf32, #tpu.memory_space<vmem>>, vector<128x128xf32>
    %c0_4 = arith.constant 0 : index
    %c0_5 = arith.constant 0 : index
    %2 = vector.load %arg1[%c0_4, %c0_5] : memref<384x128xf32, #tpu.memory_space<vmem>>, vector<384x128xf32>
    %cst = arith.constant 0.000000e+00 : f32
    %3 = vector.broadcast %cst : f32 to vector<2x1x128xf32>
    %4 = vector.extract_strided_slice %0 {offsets = [0, 0, 0], sizes = [2, 15, 128], strides = [1, 1, 1]} : vector<2x16x128xf32> to vector<2x15x128xf32>
    %5 = tpu.concatenate %3, %4 in 1 : vector<2x1x128xf32>, vector<2x15x128xf32> -> vector<2x16x128xf32>
    %6 = vector.extract_strided_slice %0 {offsets = [0, 1, 0], sizes = [2, 15, 128], strides = [1, 1, 1]} : vector<2x16x128xf32> to vector<2x15x128xf32>
    %7 = tpu.concatenate %6, %3 in 1 : vector<2x15x128xf32>, vector<2x1x128xf32> -> vector<2x16x128xf32>
    %8 = tpu.concatenate %5, %0, %7 in 2 : vector<2x16x128xf32>, vector<2x16x128xf32>, vector<2x16x128xf32> -> vector<2x16x384xf32>
    %9 = vector.shape_cast %8 : vector<2x16x384xf32> to vector<32x384xf32>
    %cst_6 = arith.constant dense<0.000000e+00> : vector<32x128xf32>
    %10 = tpu.matmul %9, %2, %cst_6 {dimension_numbers = #tpu.dot_dimension_numbers<[1], [0], [0], [1], [0, 0, 1, 1], [], []>} : vector<32x384xf32>, vector<384x128xf32>, vector<32x128xf32> -> vector<32x128xf32>
    %c0_7 = arith.constant 0 : index
    %c0_8 = arith.constant 0 : index
    %11 = vector.load %arg2[%c0_7, %c0_8] : memref<1x128xf32, #tpu.memory_space<vmem>>, vector<1x128xf32>
    %c0_9 = arith.constant 0 : index
    %c0_10 = arith.constant 0 : index
    %12 = vector.load %arg3[%c0_9, %c0_10] : memref<1x128xf32, #tpu.memory_space<vmem>>, vector<1x128xf32>
    %cst_11 = arith.constant dense<0.000000e+00> : vector<32x128xf32>
    %13 = tpu.matmul %10, %1, %cst_11 {dimension_numbers = #tpu.dot_dimension_numbers<[1], [0], [0], [1], [0, 0, 1, 1], [], []>} : vector<32x128xf32>, vector<128x128xf32>, vector<32x128xf32> -> vector<32x128xf32>
    %cst_12 = arith.constant dense<0.000000e+00> : vector<128xf32>
    %14 = vector.multi_reduction <add>, %13, %cst_12 [0] : vector<32x128xf32> to vector<128xf32>
    %15 = vector.shape_cast %14 : vector<128xf32> to vector<1x128xf32>
    %cst_13 = arith.constant 0.001953125 : f32
    %16 = vector.broadcast %cst_13 : f32 to vector<1x128xf32>
    %17 = arith.mulf %15, %16 : vector<1x128xf32>
    %18 = arith.mulf %10, %10 : vector<32x128xf32>
    %cst_14 = arith.constant dense<0.000000e+00> : vector<32x128xf32>
    %19 = tpu.matmul %18, %1, %cst_14 {dimension_numbers = #tpu.dot_dimension_numbers<[1], [0], [0], [1], [0, 0, 1, 1], [], []>} : vector<32x128xf32>, vector<128x128xf32>, vector<32x128xf32> -> vector<32x128xf32>
    %cst_15 = arith.constant dense<0.000000e+00> : vector<128xf32>
    %20 = vector.multi_reduction <add>, %19, %cst_15 [0] : vector<32x128xf32> to vector<128xf32>
    %21 = vector.shape_cast %20 : vector<128xf32> to vector<1x128xf32>
    %cst_16 = arith.constant 0.001953125 : f32
    %22 = vector.broadcast %cst_16 : f32 to vector<1x128xf32>
    %23 = arith.mulf %21, %22 : vector<1x128xf32>
    %24 = arith.mulf %17, %17 : vector<1x128xf32>
    %25 = arith.subf %23, %24 : vector<1x128xf32>
    %26 = vector.broadcast %17 : vector<1x128xf32> to vector<32x128xf32>
    %27 = arith.subf %10, %26 : vector<32x128xf32>
    %cst_17 = arith.constant 9.99999974E-6 : f32
    %28 = vector.broadcast %cst_17 : f32 to vector<1x128xf32>
    %29 = arith.addf %25, %28 : vector<1x128xf32>
    %30 = math.rsqrt %29 : vector<1x128xf32>
    %31 = vector.broadcast %30 : vector<1x128xf32> to vector<32x128xf32>
    %32 = arith.mulf %27, %31 : vector<32x128xf32>
    %33 = vector.broadcast %11 : vector<1x128xf32> to vector<32x128xf32>
    %34 = arith.mulf %32, %33 : vector<32x128xf32>
    %35 = vector.broadcast %12 : vector<1x128xf32> to vector<32x128xf32>
    %36 = arith.addf %34, %35 : vector<32x128xf32>
    %cst_18 = arith.constant 0.000000e+00 : f32
    %37 = vector.broadcast %cst_18 : f32 to vector<32x128xf32>
    %38 = arith.maximumf %36, %37 : vector<32x128xf32>
    %39 = vector.shape_cast %38 : vector<32x128xf32> to vector<2x16x128xf32>
    %c0_19 = arith.constant 0 : index
    %c0_20 = arith.constant 0 : index
    %40 = vector.load %arg4[%c0_19, %c0_20] : memref<384x128xf32, #tpu.memory_space<vmem>>, vector<384x128xf32>
    %cst_21 = arith.constant 0.000000e+00 : f32
    %41 = vector.broadcast %cst_21 : f32 to vector<2x1x128xf32>
    %42 = vector.extract_strided_slice %39 {offsets = [0, 0, 0], sizes = [2, 15, 128], strides = [1, 1, 1]} : vector<2x16x128xf32> to vector<2x15x128xf32>
    %43 = tpu.concatenate %41, %42 in 1 : vector<2x1x128xf32>, vector<2x15x128xf32> -> vector<2x16x128xf32>
    %44 = vector.extract_strided_slice %39 {offsets = [0, 1, 0], sizes = [2, 15, 128], strides = [1, 1, 1]} : vector<2x16x128xf32> to vector<2x15x128xf32>
    %45 = tpu.concatenate %44, %41 in 1 : vector<2x15x128xf32>, vector<2x1x128xf32> -> vector<2x16x128xf32>
    %46 = tpu.concatenate %43, %39, %45 in 2 : vector<2x16x128xf32>, vector<2x16x128xf32>, vector<2x16x128xf32> -> vector<2x16x384xf32>
    %47 = vector.shape_cast %46 : vector<2x16x384xf32> to vector<32x384xf32>
    %cst_22 = arith.constant dense<0.000000e+00> : vector<32x128xf32>
    %48 = tpu.matmul %47, %40, %cst_22 {dimension_numbers = #tpu.dot_dimension_numbers<[1], [0], [0], [1], [0, 0, 1, 1], [], []>} : vector<32x384xf32>, vector<384x128xf32>, vector<32x128xf32> -> vector<32x128xf32>
    %c0_23 = arith.constant 0 : index
    %c0_24 = arith.constant 0 : index
    %49 = vector.load %arg5[%c0_23, %c0_24] : memref<1x128xf32, #tpu.memory_space<vmem>>, vector<1x128xf32>
    %c0_25 = arith.constant 0 : index
    %c0_26 = arith.constant 0 : index
    %50 = vector.load %arg6[%c0_25, %c0_26] : memref<1x128xf32, #tpu.memory_space<vmem>>, vector<1x128xf32>
    %cst_27 = arith.constant dense<0.000000e+00> : vector<32x128xf32>
    %51 = tpu.matmul %48, %1, %cst_27 {dimension_numbers = #tpu.dot_dimension_numbers<[1], [0], [0], [1], [0, 0, 1, 1], [], []>} : vector<32x128xf32>, vector<128x128xf32>, vector<32x128xf32> -> vector<32x128xf32>
    %cst_28 = arith.constant dense<0.000000e+00> : vector<128xf32>
    %52 = vector.multi_reduction <add>, %51, %cst_28 [0] : vector<32x128xf32> to vector<128xf32>
    %53 = vector.shape_cast %52 : vector<128xf32> to vector<1x128xf32>
    %cst_29 = arith.constant 0.001953125 : f32
    %54 = vector.broadcast %cst_29 : f32 to vector<1x128xf32>
    %55 = arith.mulf %53, %54 : vector<1x128xf32>
    %56 = arith.mulf %48, %48 : vector<32x128xf32>
    %cst_30 = arith.constant dense<0.000000e+00> : vector<32x128xf32>
    %57 = tpu.matmul %56, %1, %cst_30 {dimension_numbers = #tpu.dot_dimension_numbers<[1], [0], [0], [1], [0, 0, 1, 1], [], []>} : vector<32x128xf32>, vector<128x128xf32>, vector<32x128xf32> -> vector<32x128xf32>
    %cst_31 = arith.constant dense<0.000000e+00> : vector<128xf32>
    %58 = vector.multi_reduction <add>, %57, %cst_31 [0] : vector<32x128xf32> to vector<128xf32>
    %59 = vector.shape_cast %58 : vector<128xf32> to vector<1x128xf32>
    %cst_32 = arith.constant 0.001953125 : f32
    %60 = vector.broadcast %cst_32 : f32 to vector<1x128xf32>
    %61 = arith.mulf %59, %60 : vector<1x128xf32>
    %62 = arith.mulf %55, %55 : vector<1x128xf32>
    %63 = arith.subf %61, %62 : vector<1x128xf32>
    %64 = vector.broadcast %55 : vector<1x128xf32> to vector<32x128xf32>
    %65 = arith.subf %48, %64 : vector<32x128xf32>
    %cst_33 = arith.constant 9.99999974E-6 : f32
    %66 = vector.broadcast %cst_33 : f32 to vector<1x128xf32>
    %67 = arith.addf %63, %66 : vector<1x128xf32>
    %68 = math.rsqrt %67 : vector<1x128xf32>
    %69 = vector.broadcast %68 : vector<1x128xf32> to vector<32x128xf32>
    %70 = arith.mulf %65, %69 : vector<32x128xf32>
    %71 = vector.broadcast %49 : vector<1x128xf32> to vector<32x128xf32>
    %72 = arith.mulf %70, %71 : vector<32x128xf32>
    %73 = vector.broadcast %50 : vector<1x128xf32> to vector<32x128xf32>
    %74 = arith.addf %72, %73 : vector<32x128xf32>
    %75 = vector.shape_cast %0 : vector<2x16x128xf32> to vector<32x128xf32>
    %76 = arith.addf %74, %75 : vector<32x128xf32>
    %cst_34 = arith.constant 0.000000e+00 : f32
    %77 = vector.broadcast %cst_34 : f32 to vector<32x128xf32>
    %78 = arith.maximumf %76, %77 : vector<32x128xf32>
    %c0_35 = arith.constant 0 : index
    %c0_36 = arith.constant 0 : index
    %79 = vector.load %arg8[%c0_35, %c0_36] : memref<32x128xf32, #tpu.memory_space<vmem>>, vector<32x128xf32>
    tpu.vector_store %arg8[%c0_35, %c0_36], %78 {strides = array<i32>} : memref<32x128xf32, #tpu.memory_space<vmem>>, vector<32x128xf32>,
    return
  }
}

</mosaic_0001>

<bundles_post_ra>
// kernel: tpu_custom_call.1
= control target key start
LH: loop header
LB: loop body
LE: loop exit
PB: predicated region body
PF: predicated region fallthrough
CT: control target
= control target key end

     0   :  { %13 = vsyncpa [#allocation3], 0  ;;  %s2239_s0 = inlined_call_operand.hbm [shape: f32[2,16,128], index: 0, kind: input, shape index: {}]   ;;  %s2240_s1 = inlined_call_operand.hbm [shape: f32[384,128], index: 1, kind: input, shape index: {}]   ;;  %s2241_s2 = inlined_call_operand.vmem [shape: f32[1,128], index: 2, kind: input, shape index: {}]   ;;  %s2242_s3 = inlined_call_operand.vmem [shape: f32[1,128], index: 3, kind: input, shape index: {}]   ;;  %s2243_s4 = inlined_call_operand.hbm [shape: f32[384,128], index: 4, kind: input, shape index: {}]   ;;  %s2244_s5 = inlined_call_operand.vmem [shape: f32[1,128], index: 5, kind: input, shape index: {}]   ;;  %s2245_s6 = inlined_call_operand.vmem [shape: f32[1,128], index: 6, kind: input, shape index: {}]   ;;  %s2246_s7 = inlined_call_operand.hbm [shape: f32[128,128], index: 7, kind: input, shape index: {}]   ;;  %s2247_s8 = inlined_call_operand.hbm [shape: f32[32,128], index: 8, kind: output, shape index: {}]  }
   0x1   :  { %14 = vsyncpa [#allocation6], 0 }
   0x2   :  { %15 = vsyncpa [#allocation9], 0 }
   0x3   :  { %16 = vsyncpa [#allocation4], 0  ;;  %s1927_s27 = smov [#allocation5]   ;;  %s1928_s29 = smov [#allocation2]  }
   0x4   :  { %s34_s28 = sshll.u32 %s1927_s27, 4  ;;  %s22_s30 = sshll.u32 %s1928_s29, 4  ;;  %s35_s28 = int_to_ptr.vmem [resolvable:$true] %s34_s28  ;;  %s1979_s30 = int_to_ptr.vmem [resolvable:$true] %s22_s30 }
   0x5   :  { %s1809_s11 = scalar_lea.hbm %s2240_s1, 6144 }
   0x6   :  { %p1810_p0 = scmp.ne.s32.totalorder %s2240_s1, %s1809_s11  ;;  %p1813_p1 = scmp.lt.u32.totalorder %s1809_s11, %s2240_s1 }
   0x8   :  { %p1815_p2 = pnand %p1813_p1, %p1810_p0 }
   0xa   :  { %1818 = shalt.err (!%p1815_p2)
}
   0xb   :  { %s1819_s16 = scalar_lea.vmem %s35_s28, 6144  ;;  %p1824_p4 = scmp.lt.s32.totalorder %s35_s28, %s35_s28 }
   0xc   :  { %p1820_p3 = scmp.ne.s32.totalorder %s35_s28, %s1819_s16  ;;  %p1825_p5 = scmp.lt.s32.totalorder %s1819_s16, %s1819_s16 }
   0xe   :  { %p1826_p6 = por %p1825_p5, %p1824_p4 }
  0x10   :  { %p1827_p7 = pnand %p1826_p6, %p1820_p3 }
  0x12   :  { %1830 = shalt.err (!%p1827_p7)
}
  0x13   :  { %s1929_s17 = smov 128   ;;  %s1930_s18 = smov 8  }
  0x14   :  { %40 = dma.hbm_to_vmem [thread:$0]  %s2240_s1, 6144, %s35_s28, [#allocation6], %s1929_s17, %s1929_s17, %s1930_s18  }
  0x15   :  { %s1831_s23 = scalar_lea.hbm %s2239_s0, 512 }
  0x16   :  { %p1832_p8 = scmp.ne.s32.totalorder %s2239_s0, %s1831_s23  ;;  %p1835_p9 = scmp.lt.u32.totalorder %s1831_s23, %s2239_s0 }
  0x18   :  { %p1837_p10 = pnand %p1835_p9, %p1832_p8 }
  0x1a   :  { %1840 = shalt.err (!%p1837_p10)
}
  0x1b   :  { %s1841_s29 = scalar_lea.vmem %s1979_s30, 512  ;;  %p1846_p12 = scmp.lt.s32.totalorder %s1979_s30, %s1979_s30 }
  0x1c   :  { %p1842_p11 = scmp.ne.s32.totalorder %s1979_s30, %s1841_s29  ;;  %p1847_p13 = scmp.lt.s32.totalorder %s1841_s29, %s1841_s29 }
  0x1e   :  { %p1848_p0 = por %p1847_p13, %p1846_p12 }
  0x20   :  { %p1849_p1 = pnand %p1848_p0, %p1842_p11 }
  0x22   :  { %1852 = shalt.err (!%p1849_p1)
}
  0x23   :  { %28 = dma.hbm_to_vmem [thread:$0]  %s2239_s0, 512, %s1979_s30, [#allocation3], %s1929_s17, %s1929_s17, %s1930_s18  }
  0x24   :  { %s1931_s9 = smov [#allocation7]   ;;  %s1932_s11 = smov [#allocation8]  }
  0x25   :  { %s50_s10 = sshll.u32 %s1931_s9, 4  ;;  %s66_s12 = sshll.u32 %s1932_s11, 4  ;;  %s51_s10 = int_to_ptr.vmem [resolvable:$true] %s50_s10  ;;  %s2016_s12 = int_to_ptr.vmem [resolvable:$true] %s66_s12 }
  0x26   :  { %s1853_s15 = scalar_lea.hbm %s2243_s4, 6144 }
  0x27   :  { %p1854_p2 = scmp.ne.s32.totalorder %s2243_s4, %s1853_s15  ;;  %p1857_p3 = scmp.lt.u32.totalorder %s1853_s15, %s2243_s4 }
  0x29   :  { %p1859_p4 = pnand %p1857_p3, %p1854_p2 }
  0x2b   :  { %1862 = shalt.err (!%p1859_p4)
}
  0x2c   :  { %s1863_s0 = scalar_lea.vmem %s51_s10, 6144  ;;  %p1868_p6 = scmp.lt.s32.totalorder %s51_s10, %s51_s10 }
  0x2d   :  { %p1864_p5 = scmp.ne.s32.totalorder %s51_s10, %s1863_s0  ;;  %p1869_p7 = scmp.lt.s32.totalorder %s1863_s0, %s1863_s0 }
  0x2f   :  { %p1870_p8 = por %p1869_p7, %p1868_p6 }
  0x31   :  { %p1871_p9 = pnand %p1870_p8, %p1864_p5 }
  0x33   :  { %1874 = shalt.err (!%p1871_p9)
}
  0x34   :  { %56 = dma.hbm_to_vmem [thread:$0]  %s2243_s4, 6144, %s51_s10, [#allocation6], %s1929_s17, %s1929_s17, %s1930_s18  }
  0x35   :  { %s1875_s25 = scalar_lea.hbm %s2246_s7, 2048 }
  0x36   :  { %p1876_p10 = scmp.ne.s32.totalorder %s2246_s7, %s1875_s25  ;;  %p1879_p11 = scmp.lt.u32.totalorder %s1875_s25, %s2246_s7 }
  0x38   :  { %p1881_p12 = pnand %p1879_p11, %p1876_p10 }
  0x3a   :  { %1884 = shalt.err (!%p1881_p12)
}
  0x3b   :  { %s1885_s28 = scalar_lea.vmem %s2016_s12, 2048  ;;  %p1890_p0 = scmp.lt.s32.totalorder %s2016_s12, %s2016_s12 }
  0x3c   :  { %p1886_p13 = scmp.ne.s32.totalorder %s2016_s12, %s1885_s28  ;;  %p1891_p1 = scmp.lt.s32.totalorder %s1885_s28, %s1885_s28 }
  0x3e   :  { %p1892_p2 = por %p1891_p1, %p1890_p0 }
  0x40   :  { %p1893_p3 = pnand %p1892_p2, %p1886_p13 }
  0x42   :  { %1896 = shalt.err (!%p1893_p3)
}
  0x43   :  { %72 = dma.hbm_to_vmem [thread:$0]  %s2246_s7, 2048, %s2016_s12, [#allocation9], %s1929_s17, %s1929_s17, %s1930_s18  }
  0x44   :  { %1919 = dma.done.wait [#allocation3], 512  }
  0x45   :  { %1920 = vsyncadd [#allocation3], 4294966784 }
  0x46   :  { %1921 = dma.done.wait [#allocation6], 12288  }
  0x47   :  { %1922 = vsyncadd [#allocation6], 4294955008 }
  0x48   :  { %1923 = dma.done.wait [#allocation9], 2048  }
  0x49   :  { %1924 = vsyncadd [#allocation9], 4294965248  ;;  %v121_v0 = vld [vmem:[#allocation5 + $0x80] sm:$0xff]  ;;  %v122_v1 = vld [vmem:[#allocation5 + $0x88] sm:$0xff]  ;;  %vm170_vm0 = vcmask 1046528   ;;  %vm157_vm1 = vcmask 1040384  }
  0x4a   :  { %v105_v2 = vld [vmem:[#allocation5] sm:$0xff]  ;;  %v1542_v3 = vpack.c.bf16 %v122_v1, %v121_v0  ;;  %v106_v4 = vld [vmem:[#allocation5 + $0x8] sm:$0xff]  ;;  %v123_v9 = vld [vmem:[#allocation5 + $0x90] sm:$0xff]  ;;  %s1933_s15 = smov [#allocation10]  }
  0x4b   :  { %v137_v5 = vld [vmem:[#allocation5 + $0x100] sm:$0xff]  ;;  %v138_v6 = vld [vmem:[#allocation5 + $0x108] sm:$0xff]  ;;  %v1544_v7 = vpack.c.bf16 %v106_v4, %v105_v2  ;;  %v124_v10 = vld [vmem:[#allocation5 + $0x98] sm:$0xff]  ;;  %s1076_s16 = sshll.u32 %s1933_s15, 4  ;;  %s1077_s16 = int_to_ptr.vmem [resolvable:$true] %s1076_s16 }
  0x4c   :  { %v1574_v8 = vpack.c.bf16 %v138_v6, %v137_v5  ;;  %v107_v11 = vld [vmem:[#allocation5 + $0x10] sm:$0xff]  ;;  %1543 = vmatprep.subr.bf16.mxu0 %v1542_v3  ;;  %v1546_v12 = vpack.c.bf16 %v124_v10, %v123_v9  ;;  %v108_v13 = vld [vmem:[#allocation5 + $0x18] sm:$0xff]  ;;  %v125_v18 = vld [vmem:[#allocation5 + $0xa0] sm:$0xff]  ;;  %p1902_p5 = scmp.lt.s32.totalorder %s1077_s16, %s1077_s16 }
  0x4d   :  { %v139_v14 = vld [vmem:[#allocation5 + $0x110] sm:$0xff]  ;;  %v140_v15 = vld [vmem:[#allocation5 + $0x118] sm:$0xff]  ;;  %1545 = vmatpush3.bf16.msra.mxu0 %v1544_v7  ;;  %v1548_v16 = vpack.c.bf16 %v108_v13, %v107_v11  ;;  %v126_v19 = vld [vmem:[#allocation5 + $0xa8] sm:$0xff] }
  0x4e   :  { %1575 = vmatprep.subr.bf16.mxu1 %v1574_v8  ;;  %v1578_v17 = vpack.c.bf16 %v140_v15, %v139_v14  ;;  %v109_v20 = vld [vmem:[#allocation5 + $0x20] sm:$0xff]  ;;  %1547 = vmatprep.subr.bf16.mxu0 %v1546_v12  ;;  %v1550_v21 = vpack.c.bf16 %v126_v19, %v125_v18  ;;  %v110_v22 = vld [vmem:[#allocation5 + $0x28] sm:$0xff]  ;;  %v127_v26 = vld [vmem:[#allocation5 + $0xb0] sm:$0xff] }
  0x4f   :  { %1577 = vmatpush3.bf16.msra.mxu1 %v1574_v8  ;;  %v141_v23 = vld [vmem:[#allocation5 + $0x120] sm:$0xff]  ;;  %v142_v24 = vld [vmem:[#allocation5 + $0x128] sm:$0xff]  ;;  %v128_v27 = vld [vmem:[#allocation5 + $0xb8] sm:$0xff]  ;;  %v1552_v30 = vpack.c.bf16 %v110_v22, %v109_v20 }
  0x50   :  { %1579 = vmatprep.subr.bf16.mxu1 %v1578_v17  ;;  %v1582_v25 = vpack.c.bf16 %v142_v24, %v141_v23  ;;  %v143_v28 = vld [vmem:[#allocation5 + $0x130] sm:$0xff]  ;;  %v144_v29 = vld [vmem:[#allocation5 + $0x138] sm:$0xff]  ;;  %v1554_v31 = vpack.c.bf16 %v128_v27, %v127_v26  ;;  %v129_v35 = vld [vmem:[#allocation5 + $0xc0] sm:$0xff] }
  0x51   :  { %1549 = vmatpush3.bf16.msra.mxu0 %v1548_v16  ;;  %v111_v32 = vld [vmem:[#allocation5 + $0x30] sm:$0xff]  ;;  %v112_v33 = vld [vmem:[#allocation5 + $0x38] sm:$0xff]  ;;  %v1586_v34 = vpack.c.bf16 %v144_v29, %v143_v28  ;;  %v130_v36 = vld [vmem:[#allocation5 + $0xc8] sm:$0xff] }
  0x52   :  { %1551 = vmatprep.subr.bf16.mxu0 %v1550_v21  ;;  %v145_v37 = vld [vmem:[#allocation5 + $0x140] sm:$0xff]  ;;  %v146_v38 = vld [vmem:[#allocation5 + $0x148] sm:$0xff]  ;;  %v1556_v39 = vpack.c.bf16 %v112_v33, %v111_v32  ;;  %v1558_v40 = vpack.c.bf16 %v130_v36, %v129_v35  ;;  %v131_v44 = vld [vmem:[#allocation5 + $0xd0] sm:$0xff] }
  0x53   :  { %1581 = vmatpush3.bf16.msra.mxu1 %v1578_v17  ;;  %v113_v41 = vld [vmem:[#allocation5 + $0x40] sm:$0xff]  ;;  %v114_v42 = vld [vmem:[#allocation5 + $0x48] sm:$0xff]  ;;  %v1590_v43 = vpack.c.bf16 %v146_v38, %v145_v37  ;;  %v132_v45 = vld [vmem:[#allocation5 + $0xd8] sm:$0xff] }
  0x54   :  { %1583 = vmatprep.subr.bf16.mxu1 %v1582_v25  ;;  %v147_v46 = vld [vmem:[#allocation5 + $0x150] sm:$0xff]  ;;  %v148_v47 = vld [vmem:[#allocation5 + $0x158] sm:$0xff]  ;;  %v1560_v48 = vpack.c.bf16 %v114_v42, %v113_v41  ;;  %v2053_v49 = vld [vmem:[#allocation2] sm:$0xff]  ;;  %v1562_v51 = vpack.c.bf16 %v132_v45, %v131_v44 }
  0x55   :  { %1553 = vmatpush3.bf16.msra.mxu0 %v1552_v30  ;;  %v2055_v50 = vld [vmem:[#allocation2 + $0x8] sm:$0xff]  ;;  %v115_v52 = vld [vmem:[#allocation5 + $0x50] sm:$0xff]  ;;  %v116_v53 = vld [vmem:[#allocation5 + $0x58] sm:$0xff]  ;;  %v171_v54 = vrot.slane %v2053_v49, 1  ;;  %v1594_v56 = vpack.c.bf16 %v148_v47, %v147_v46  ;;  %247 = vmatprep.mubr.f32.mxu0 %v2053_v49  ;;  %v158_v20 = vrot.slane %v2053_v49, 7 }
  0x56   :  { %1555 = vmatprep.subr.bf16.mxu0 %v1554_v31  ;;  %v172_v55 = vrot.slane %v2055_v50, 1  ;;  %v133_v57 = vld [vmem:[#allocation5 + $0xe0] sm:$0xff]  ;;  %v134_v58 = vld [vmem:[#allocation5 + $0xe8] sm:$0xff]  ;;  %v1564_v62 = vpack.c.bf16 %v116_v53, %v115_v52  ;;  %v135_v3 = vld [vmem:[#allocation5 + $0xf0] sm:$0xff]  ;;  %v159_v24 = vrot.slane %v2055_v50, 7 }
  0x57   :  { %1585 = vmatpush3.bf16.msra.mxu1 %v1582_v25  ;;  %v149_v59 = vld [vmem:[#allocation5 + $0x160] sm:$0xff]  ;;  %v150_v60 = vld [vmem:[#allocation5 + $0x168] sm:$0xff]  ;;  %v1566_v63 = vpack.c.bf16 %v134_v58, %v133_v57  ;;  %v136_v4 = vld [vmem:[#allocation5 + $0xf8] sm:$0xff] }
  0x58   :  { %1587 = vmatprep.subr.bf16.mxu1 %v1586_v34  ;;  %v173_v61 = vsel %vm170_vm0, %v171_v54, %v172_v55  ;;  %v117_v0 = vld [vmem:[#allocation5 + $0x60] sm:$0xff]  ;;  %v118_v1 = vld [vmem:[#allocation5 + $0x68] sm:$0xff]  ;;  %v1598_v2 = vpack.c.bf16 %v150_v60, %v149_v59  ;;  %v151_v5 = vld [vmem:[#allocation5 + $0x170] sm:$0xff]  ;;  %v1570_v8 = vpack.c.bf16 %v136_v4, %v135_v3  ;;  %v160_v29 = vsel %vm157_vm1, %v158_v20, %v159_v24 }
  0x59   :  { %1557 = vmatpush3.bf16.msra.mxu0 %v1556_v39  ;;  %1346 = vmatprep.mubr.f32.mxu1 %v173_v61  ;;  %v152_v6 = vld [vmem:[#allocation5 + $0x178] sm:$0xff]  ;;  %v1568_v7 = vpack.c.bf16 %v118_v1, %v117_v0  ;;  %v119_v9 = vld [vmem:[#allocation5 + $0x70] sm:$0xff]  ;;  %v89_v12 = vld [vmem:[#allocation8] sm:$0xff] }
  0x5a   :  { %1559 = vmatprep.subr.bf16.mxu0 %v1558_v40  ;;  %v120_v10 = vld [vmem:[#allocation5 + $0x78] sm:$0xff]  ;;  %v1602_v11 = vpack.c.bf16 %v152_v6, %v151_v5  ;;  %v90_v13 = vld [vmem:[#allocation8 + $0x8] sm:$0xff]  ;;  %v2061_v14 = vld [vmem:[#allocation2 + $0x10] sm:$0xff] }
  0x5b   :  { %1589 = vmatpush3.bf16.msra.mxu1 %v1586_v34  ;;  %v2063_v15 = vld [vmem:[#allocation2 + $0x18] sm:$0xff]  ;;  %v1572_v16 = vpack.c.bf16 %v120_v10, %v119_v9  ;;  %v2065_v17 = vpack.c.bf16 %v90_v13, %v89_v12  ;;  %v174_v18 = vrot.slane %v2061_v14, 1  ;;  %v91_v21 = vld [vmem:[#allocation8 + $0x10] sm:$0xff]  ;;  %vm2071_vm2 = vmneg %vm157_vm1  ;;  %v161_v31 = vrot.slane %v2061_v14, 7 }
  0x5c   :  { %1591 = vmatprep.subr.bf16.mxu1 %v1590_v43  ;;  %v175_v19 = vrot.slane %v2063_v15, 1  ;;  %v92_v22 = vld [vmem:[#allocation8 + $0x18] sm:$0xff]  ;;  %v93_v27 = vld [vmem:[#allocation8 + $0x20] sm:$0xff]  ;;  %v94_v28 = vld [vmem:[#allocation8 + $0x28] sm:$0xff]  ;;  %v162_v34 = vrot.slane %v2063_v15, 7 }
  0x5d   :  { %1561 = vmatpush3.bf16.msra.mxu0 %v1560_v48  ;;  %v2079_v26 = vpack.c.bf16 %v92_v22, %v91_v21  ;;  %v2089_v30 = vpack.c.bf16 %v94_v28, %v93_v27  ;;  %v95_v32 = vld [vmem:[#allocation8 + $0x30] sm:$0xff]  ;;  %v96_v33 = vld [vmem:[#allocation8 + $0x38] sm:$0xff]  ;;  %v97_v36 = vld [vmem:[#allocation8 + $0x40] sm:$0xff] }
  0x5e   :  { %1563 = vmatprep.subr.bf16.mxu0 %v1562_v51  ;;  %v176_v25 = vsel %vm170_vm0, %v174_v18, %v175_v19  ;;  %v2099_v35 = vpack.c.bf16 %v96_v33, %v95_v32  ;;  %v98_v37 = vld [vmem:[#allocation8 + $0x48] sm:$0xff]  ;;  %v163_v38 = vsel %vm157_vm1, %v161_v31, %v162_v34  ;;  %v99_v40 = vld [vmem:[#allocation8 + $0x50] sm:$0xff]  ;;  %v100_v41 = vld [vmem:[#allocation8 + $0x58] sm:$0xff] }
  0x5f   :  { %1593 = vmatpush3.bf16.msra.mxu1 %v1590_v43  ;;  %v2109_v39 = vpack.c.bf16 %v98_v37, %v97_v36  ;;  %v2115_v42 = vpack.c.bf16 %v100_v41, %v99_v40  ;;  %v101_v43 = vld [vmem:[#allocation8 + $0x60] sm:$0xff]  ;;  %v102_v44 = vld [vmem:[#allocation8 + $0x68] sm:$0xff]  ;;  %v103_v46 = vld [vmem:[#allocation8 + $0x70] sm:$0xff] }
  0x60   :  { %1595 = vmatprep.subr.bf16.mxu1 %v1594_v56  ;;  %v2124_v45 = vpack.c.bf16 %v102_v44, %v101_v43  ;;  %v104_v47 = vld [vmem:[#allocation8 + $0x78] sm:$0xff]  ;;  %v602_v12 = vld [vmem:[#allocation7 + $0x88] sm:$0xff]  ;;  %v603_v24 = vld [vmem:[#allocation7 + $0x90] sm:$0xff] }
  0x61   :  { %1565 = vmatpush3.bf16.msra.mxu0 %v1564_v62  ;;  %v2130_v48 = vpack.c.bf16 %v104_v47, %v103_v46  ;;  %v586_v18 = vld [vmem:[#allocation7 + $0x8] sm:$0xff]  ;;  %v587_v28 = vld [vmem:[#allocation7 + $0x10] sm:$0xff]  ;;  %v620_v33 = vld [vmem:[#allocation7 + $0x118] sm:$0xff] }
  0x62   :  { %1567 = vmatprep.subr.bf16.mxu0 %v1566_v63  ;;  %v618_v21 = vld [vmem:[#allocation7 + $0x108] sm:$0xff]  ;;  %v619_v32 = vld [vmem:[#allocation7 + $0x110] sm:$0xff]  ;;  %v605_v36 = vld [vmem:[#allocation7 + $0xa0] sm:$0xff] }
  0x63   :  { %1597 = vmatpush3.bf16.msra.mxu1 %v1594_v56  ;;  %v1706_v34 = vpack.c.bf16 %v620_v33, %v619_v32  ;;  %v606_v37 = vld [vmem:[#allocation7 + $0xa8] sm:$0xff]  ;;  %v589_v40 = vld [vmem:[#allocation7 + $0x20] sm:$0xff]  ;;  %v616_v32 = vld [vmem:[#allocation7 + $0xf8] sm:$0xff] }
  0x64   :  { %1599 = vmatprep.subr.bf16.mxu1 %v1598_v2  ;;  %v590_v41 = vld [vmem:[#allocation7 + $0x28] sm:$0xff]  ;;  %v621_v44 = vld [vmem:[#allocation7 + $0x120] sm:$0xff] }
  0x65   :  { %1569 = vmatpush3.bf16.msra.mxu0 %v1568_v7  ;;  %v1680_v43 = vpack.c.bf16 %v590_v41, %v589_v40  ;;  %v622_v46 = vld [vmem:[#allocation7 + $0x128] sm:$0xff]  ;;  %v631_v41 = vld [vmem:[#allocation7 + $0x170] sm:$0xff] }
  0x66   :  { %1571 = vmatprep.subr.bf16.mxu0 %v1570_v8  ;;  %v1710_v47 = vpack.c.bf16 %v622_v46, %v621_v44 }
  0x67   :  { %1601 = vmatpush3.bf16.msra.mxu1 %v1598_v2 }
  0x68   :  { %1603 = vmatprep.subr.bf16.mxu1 %v1602_v11 }
  0x69   :  { %1573 = vmatpush3.bf16.msra.mxu0 %v1572_v16  ;;  %v585_v16 = vld [vmem:[#allocation7] sm:$0xff] }
  0x6a   :  { %1607 = vmatprep.subr.bf16.mxu0 %v2065_v17 }
  0x6b   :  { %1605 = vmatpush3.bf16.msra.mxu1 %v1602_v11  ;;  %v601_v11 = vld [vmem:[#allocation7 + $0x80] sm:$0xff] }
  0x6c   :  { %1639 = vmatprep.subr.bf16.mxu1 %v2065_v17  ;;  %1091 = vmatmul.mubr.msk.f32.vlgmr.msra.gmra.mrb[0].mxu0 %vm2071_vm2, %v158_v20  ;;  %v1670_v13 = vpack.c.bf16 %v602_v12, %v601_v11  ;;  %v617_v20 = vld [vmem:[#allocation7 + $0x100] sm:$0xff]  ;;  %v595_v11 = vld [vmem:[#allocation7 + $0x50] sm:$0xff]  ;;  %v596_v12 = vld [vmem:[#allocation7 + $0x58] sm:$0xff] }
  0x6d   :  { %252 = vmatprep.mubr.f32.mxu0 %v2055_v50  ;;  %1609 = vmatpush3.bf16.msra.mxu0 %v2065_v17  ;;  %v1702_v22 = vpack.c.bf16 %v618_v21, %v617_v20  ;;  %v614_v21 = vld [vmem:[#allocation7 + $0xe8] sm:$0xff] }
  0x6e   :  { %1347 = vmatmul.mubr.msk.f32.vlgmr.msra.gmra.mrb[0].mxu1 %vm170_vm0, %v172_v55  ;;  %1611 = vmatprep.subr.bf16.mxu0 %v2079_v26 }
  0x6f   :  { %1349 = vmatprep.mubr.f32.mxu1 %v176_v25  ;;  %1641 = vmatpush3.bf16.msra.mxu1 %v2065_v17  ;;  %v604_v25 = vld [vmem:[#allocation7 + $0x98] sm:$0xff] }
  0x70   :  { %253 = vmatmul.mubr.f32.gmra.mrb[2].mxu0 %v160_v29  ;;  %1643 = vmatprep.subr.bf16.mxu1 %v2079_v26  ;;  %v1674_v27 = vpack.c.bf16 %v604_v25, %v603_v24  ;;  %v588_v29 = vld [vmem:[#allocation7 + $0x18] sm:$0xff]  ;;  %v629_v24 = vld [vmem:[#allocation7 + $0x160] sm:$0xff]  ;;  %v630_v25 = vld [vmem:[#allocation7 + $0x168] sm:$0xff] }
  0x71   :  { %257 = vmatprep.mubr.f32.mxu0 %v2061_v14  ;;  %1613 = vmatpush3.bf16.msra.mxu0 %v2079_v26  ;;  %v1726_v33 = vpack.c.bf16 %v630_v25, %v629_v24 }
  0x72   :  { %1350 = vmatmul.mubr.msk.f32.gmra.mrb[2].mxu1 %vm170_vm0, %v175_v19  ;;  %1615 = vmatprep.subr.bf16.mxu0 %v2089_v30  ;;  %v1672_v19 = vpack.c.bf16 %v586_v18, %v585_v16  ;;  %v627_v16 = vld [vmem:[#allocation7 + $0x150] sm:$0xff]  ;;  %v628_v18 = vld [vmem:[#allocation7 + $0x158] sm:$0xff] }
  0x73   :  { %1645 = vmatpush3.bf16.msra.mxu1 %v2079_v26  ;;  %v1722_v20 = vpack.c.bf16 %v628_v18, %v627_v16 }
  0x74   :  { %1093 = vmatmul.mubr.msk.f32.gmra.mrb[4].mxu0 %vm2071_vm2, %v161_v31  ;;  %1647 = vmatprep.subr.bf16.mxu1 %v2089_v30  ;;  %v1676_v31 = vpack.c.bf16 %v588_v29, %v587_v28  ;;  %v597_v28 = vld [vmem:[#allocation7 + $0x60] sm:$0xff]  ;;  %v598_v29 = vld [vmem:[#allocation7 + $0x68] sm:$0xff] }
  0x75   :  { %262 = vmatprep.mubr.f32.mxu0 %v2063_v15  ;;  %1617 = vmatpush3.bf16.msra.mxu0 %v2089_v30 }
  0x76   :  { %1619 = vmatprep.subr.bf16.mxu0 %v2099_v35 }
  0x77   :  { %1649 = vmatpush3.bf16.msra.mxu1 %v2089_v30 }
  0x78   :  { %263 = vmatmul.mubr.f32.gmra.mrb[6].mxu0 %v163_v38  ;;  %1651 = vmatprep.subr.bf16.mxu1 %v2099_v35  ;;  %v1678_v38 = vpack.c.bf16 %v606_v37, %v605_v36  ;;  %v599_v37 = vld [vmem:[#allocation7 + $0x70] sm:$0xff] }
  0x79   :  { %1621 = vmatpush3.bf16.msra.mxu0 %v2099_v35 }
  0x7a   :  { %1623 = vmatprep.subr.bf16.mxu0 %v2109_v39 }
  0x7b   :  { %1653 = vmatpush3.bf16.msra.mxu1 %v2099_v35 }
  0x7c   :  { %1655 = vmatprep.subr.bf16.mxu1 %v2109_v39 }
  0x7d   :  { %1625 = vmatpush3.bf16.msra.mxu0 %v2109_v39 }
  0x7e   :  { %1627 = vmatprep.subr.bf16.mxu0 %v2115_v42 }
  0x7f   :  { %1657 = vmatpush3.bf16.msra.mxu1 %v2109_v39 }
  0x80   :  { %1659 = vmatprep.subr.bf16.mxu1 %v2115_v42 }
  0x81   :  { %1629 = vmatpush3.bf16.msra.mxu0 %v2115_v42 }
  0x82   :  { %1631 = vmatprep.subr.bf16.mxu0 %v2124_v45 }
  0x83   :  { %1661 = vmatpush3.bf16.msra.mxu1 %v2115_v42 }
  0x84   :  { %1663 = vmatprep.subr.bf16.mxu1 %v2124_v45 }
  0x85   :  { %1633 = vmatpush3.bf16.msra.mxu0 %v2124_v45 }
  0x86   :  { %1635 = vmatprep.subr.bf16.mxu0 %v2130_v48 }
  0x87   :  { %1665 = vmatpush3.bf16.msra.mxu1 %v2124_v45 }
  0x88   :  { %1667 = vmatprep.subr.bf16.mxu1 %v2130_v48 }
  0x89   :  { %1637 = vmatpush3.bf16.msra.mxu0 %v2130_v48 }
  0x8a   :  { %1671 = vmatprep.subr.bf16.mxu0 %v1670_v13 }
  0x8b   :  { %1669 = vmatpush3.bf16.msra.mxu1 %v2130_v48 }
  0x8c   :  { %1703 = vmatprep.subr.bf16.mxu1 %v1702_v22 }
 0x13f   :  { %v1138_v51 = vpop.f32.mrb[0].mxu0 }
 0x140   :  { %v1139_v52 = vpop.f32.mrb[1].mxu0 }
 0x141   :  { %v1348_v53 = vpop.f32.mrb[0].mxu1  ;;  %v1140_v54 = vadd.f32 %v1139_v52, %v1138_v51  ;;  %v607_v51 = vld [vmem:[#allocation7 + $0xb0] sm:$0xff]  ;;  %v608_v52 = vld [vmem:[#allocation7 + $0xb8] sm:$0xff] }
 0x142   :  { %v334_v55 = vpop.f32.mrb[1].mxu1 }
 0x143   :  { %v2136_v56 = vadd.f32 %v1140_v54, %v334_v55  ;;  %v1141_v57 = vpop.f32.mrb[2].mxu0  ;;  %v591_v54 = vld [vmem:[#allocation7 + $0x30] sm:$0xff]  ;;  %v592_v55 = vld [vmem:[#allocation7 + $0x38] sm:$0xff] }
 0x144   :  { %v1142_v58 = vpop.f32.mrb[3].mxu0 }
 0x145   :  { %v1351_v59 = vpop.f32.mrb[2].mxu1  ;;  %v1143_v60 = vadd.f32 %v1142_v58, %v1141_v57  ;;  %1384 = vmatprep.mubr.f32.mxu0 %v2136_v56  ;;  %v450_v61 = vmul.f32 %v2136_v56, %v2136_v56  ;;  %v1684_v57 = vpack.c.bf16 %v592_v55, %v591_v54  ;;  %v623_v58 = vld [vmem:[#allocation7 + $0x130] sm:$0xff] }
 0x146   :  { %v344_v62 = vpop.f32.mrb[3].mxu1 }
 0x147   :  { %v2141_v63 = vadd.f32 %v1348_v53, %v1143_v60  ;;  %v1144_v0 = vpop.f32.mrb[4].mxu0  ;;  %1422 = vmatprep.mubr.f32.mxu1 %v450_v61  ;;  %v1682_v53 = vpack.c.bf16 %v608_v52, %v607_v51  ;;  %v609_v60 = vld [vmem:[#allocation7 + $0xc0] sm:$0xff] }
 0x148   :  { %v1145_v1 = vpop.f32.mrb[5].mxu0 }
 0x149   :  { %v451_v2 = vmul.f32 %v2141_v63, %v2141_v63  ;;  %v1146_v3 = vadd.f32 %v1145_v1, %v1144_v0  ;;  %1385 = vmatmul.mubr.f32.vlgmr.msra.gmra.mrb[8].mxu0 %v2141_v63  ;;  %v593_v0 = vld [vmem:[#allocation7 + $0x40] sm:$0xff]  ;;  %v594_v1 = vld [vmem:[#allocation7 + $0x48] sm:$0xff] }
 0x14a   :  { %1673 = vmatpush3.bf16.msra.mxu0 %v1672_v19  ;;  %v613_v19 = vld [vmem:[#allocation7 + $0xe0] sm:$0xff] }
 0x14b   :  { %v2146_v4 = vadd.f32 %v1146_v3, %v344_v62  ;;  %v1147_v5 = vpop.f32.mrb[6].mxu0  ;;  %1423 = vmatmul.mubr.f32.vlgmr.msra.gmra.mrb[4].mxu1 %v451_v2  ;;  %1675 = vmatprep.subr.bf16.mxu0 %v1674_v27  ;;  %v610_v62 = vld [vmem:[#allocation7 + $0xc8] sm:$0xff]  ;;  %v1688_v3 = vpack.c.bf16 %v594_v1, %v593_v0  ;;  %v1694_v27 = vpack.c.bf16 %v614_v21, %v613_v19 }
 0x14c   :  { %v1148_v6 = vpop.f32.mrb[7].mxu0  ;;  %1705 = vmatpush3.bf16.msra.mxu1 %v1702_v22  ;;  %v1686_v2 = vpack.c.bf16 %v610_v62, %v609_v60  ;;  %v1692_v22 = vpack.c.bf16 %v596_v12, %v595_v11 }
 0x14d   :  { %v1149_v7 = vadd.f32 %v1148_v6, %v1147_v5  ;;  %1387 = vmatprep.mubr.f32.mxu0 %v2146_v4  ;;  %v452_v8 = vmul.f32 %v2146_v4, %v2146_v4  ;;  %1707 = vmatprep.subr.bf16.mxu1 %v1706_v34  ;;  %v625_v5 = vld [vmem:[#allocation7 + $0x140] sm:$0xff]  ;;  %v626_v6 = vld [vmem:[#allocation7 + $0x148] sm:$0xff] }
 0x14e   :  { %1677 = vmatpush3.bf16.msra.mxu0 %v1676_v31  ;;  %v615_v31 = vld [vmem:[#allocation7 + $0xf0] sm:$0xff] }
 0x14f   :  { %v2151_v9 = vadd.f32 %v1351_v59, %v1149_v7  ;;  %1425 = vmatprep.mubr.f32.mxu1 %v452_v8  ;;  %1679 = vmatprep.subr.bf16.mxu0 %v1678_v38  ;;  %v624_v59 = vld [vmem:[#allocation7 + $0x138] sm:$0xff]  ;;  %v611_v7 = vld [vmem:[#allocation7 + $0xd0] sm:$0xff]  ;;  %v1718_v8 = vpack.c.bf16 %v626_v6, %v625_v5  ;;  %v1698_v36 = vpack.c.bf16 %v616_v32, %v615_v31  ;;  %v1096_v31 = vld [vmem:[%s2241_s2] ss:$0 sm:$0xff] }
 0x150   :  { %1709 = vmatpush3.bf16.msra.mxu1 %v1706_v34  ;;  %v1714_v61 = vpack.c.bf16 %v624_v59, %v623_v58  ;;  %v1696_v34 = vpack.c.bf16 %v598_v29, %v597_v28  ;;  %v600_v38 = vld [vmem:[#allocation7 + $0x78] sm:$0xff] }
 0x151   :  { %1388 = vmatmul.mubr.f32.gmra.mrb[10].mxu0 %v2151_v9  ;;  %v453_v10 = vmul.f32 %v2151_v9, %v2151_v9  ;;  %1711 = vmatprep.subr.bf16.mxu1 %v1710_v47  ;;  %v1700_v40 = vpack.c.bf16 %v600_v38, %v599_v37  ;;  %v1097_v37 = vld [vmem:[%s2242_s3] ss:$0 sm:$0xff] }
 0x152   :  { %1681 = vmatpush3.bf16.msra.mxu0 %v1680_v43  ;;  %v632_v43 = vld [vmem:[#allocation7 + $0x178] sm:$0xff] }
 0x153   :  { %1426 = vmatmul.mubr.f32.gmra.mrb[6].mxu1 %v453_v10  ;;  %1683 = vmatprep.subr.bf16.mxu0 %v1682_v53  ;;  %v612_v10 = vld [vmem:[#allocation7 + $0xd8] sm:$0xff]  ;;  %v1730_v44 = vpack.c.bf16 %v632_v43, %v631_v41 }
 0x154   :  { %1713 = vmatpush3.bf16.msra.mxu1 %v1710_v47  ;;  %v1690_v13 = vpack.c.bf16 %v612_v10, %v611_v7 }
 0x155   :  { %1715 = vmatprep.subr.bf16.mxu1 %v1714_v61 }
 0x156   :  { %1685 = vmatpush3.bf16.msra.mxu0 %v1684_v57 }
 0x157   :  { %1687 = vmatprep.subr.bf16.mxu0 %v1686_v2 }
 0x158   :  { %1717 = vmatpush3.bf16.msra.mxu1 %v1714_v61 }
 0x159   :  { %1719 = vmatprep.subr.bf16.mxu1 %v1718_v8 }
 0x15a   :  { %1689 = vmatpush3.bf16.msra.mxu0 %v1688_v3 }
 0x15b   :  { %1691 = vmatprep.subr.bf16.mxu0 %v1690_v13 }
 0x15c   :  { %1721 = vmatpush3.bf16.msra.mxu1 %v1718_v8 }
 0x15d   :  { %1723 = vmatprep.subr.bf16.mxu1 %v1722_v20 }
 0x15e   :  { %1693 = vmatpush3.bf16.msra.mxu0 %v1692_v22 }
 0x15f   :  { %1695 = vmatprep.subr.bf16.mxu0 %v1694_v27 }
 0x160   :  { %1725 = vmatpush3.bf16.msra.mxu1 %v1722_v20 }
 0x161   :  { %1727 = vmatprep.subr.bf16.mxu1 %v1726_v33 }
 0x162   :  { %1697 = vmatpush3.bf16.msra.mxu0 %v1696_v34 }
 0x163   :  { %1699 = vmatprep.subr.bf16.mxu0 %v1698_v36 }
 0x164   :  { %1729 = vmatpush3.bf16.msra.mxu1 %v1726_v33 }
 0x165   :  { %1731 = vmatprep.subr.bf16.mxu1 %v1730_v44 }
 0x166   :  { %1701 = vmatpush3.bf16.msra.mxu0 %v1700_v40 }
 0x167   :  { %1735 = vmatprep.subr.bf16.mxu0 %v2065_v17 }
 0x168   :  { %1733 = vmatpush3.bf16.msra.mxu1 %v1730_v44 }
 0x169   :  { %1767 = vmatprep.subr.bf16.mxu1 %v2065_v17 }
 0x21c   :  { %v1386_v46 = vpop.f32.mrb[8].mxu0 }
 0x21d   :  { %v421_v47 = vpop.f32.mrb[9].mxu0 }
 0x21e   :  { %v440_v51 = vadd.f32 %v1386_v46, %v421_v47  ;;  %v1424_v52 = vpop.f32.mrb[4].mxu1 }
 0x21f   :  { %v520_v53 = vpop.f32.mrb[5].mxu1 }
 0x220   :  { %v539_v54 = vadd.f32 %v1424_v52, %v520_v53 }
 0x224   :  { %v1389_v55 = vpop.f32.mrb[10].mxu0 }
 0x225   :  { %v431_v57 = vpop.f32.mrb[11].mxu0 }
 0x226   :  { %v441_v58 = vadd.f32 %v440_v51, %v431_v57  ;;  %v1427_v59 = vpop.f32.mrb[6].mxu1 }
 0x227   :  { %v530_v60 = vpop.f32.mrb[7].mxu1 }
 0x228   :  { %v442_v61 = vadd.f32 %v1389_v55, %v441_v58  ;;  %v540_v62 = vadd.f32 %v539_v54, %v530_v60 }
 0x22a   :  { %v443_v0 = vrot.slane %v442_v61, 4  ;;  %v541_v1 = vadd.f32 %v1427_v59, %v540_v62 }
 0x22c   :  { %v444_v2 = vadd.f32 %v443_v0, %v442_v61  ;;  %v542_v3 = vrot.slane %v541_v1, 4 }
 0x22e   :  { %v445_v5 = vrot.slane %v444_v2, 2  ;;  %v543_v6 = vadd.f32 %v542_v3, %v541_v1 }
 0x230   :  { %v446_v7 = vadd.f32 %v445_v5, %v444_v2  ;;  %v544_v8 = vrot.slane %v543_v6, 2 }
 0x232   :  { %v447_v10 = vrot.slane %v446_v7, 1  ;;  %v545_v11 = vadd.f32 %v544_v8, %v543_v6 }
 0x234   :  { %v448_v12 = vadd.f32 %v447_v10, %v446_v7  ;;  %v546_v13 = vrot.slane %v545_v11, 1 }
 0x236   :  { %v449_v16 = vmul.f32 0.001953125, %v448_v12  ;;  %v547_v18 = vadd.f32 %v546_v13, %v545_v11 }
 0x238   :  { %v548_v19 = vmul.f32 0.001953125, %v547_v18  ;;  %v549_v20 = vmul.f32 %v449_v16, %v449_v16  ;;  %v551_v24 = vsub.f32 %v2136_v56, %v449_v16  ;;  %v552_v25 = vsub.f32 %v2141_v63, %v449_v16 }
 0x239   :  { %v553_v27 = vsub.f32 %v2146_v4, %v449_v16  ;;  %v554_v28 = vsub.f32 %v2151_v9, %v449_v16 }
 0x23a   :  { %v550_v21 = vsub.f32 %v548_v19, %v549_v20 }
 0x23c   :  { %v555_v22 = vadd.f32 1e-05, %v550_v21 }
 0x23e   :  { %1805 = vrsqrt.f32 %v555_v22 }
 0x248   :  { %v1806_v29 = vpop.eup %1805 }
 0x249   :  { %v557_v32 = vmul.f32 %v1806_v29, %v551_v24  ;;  %v558_v33 = vmul.f32 %v1806_v29, %v552_v25  ;;  %v559_v34 = vmul.f32 %v1806_v29, %v553_v27  ;;  %v560_v36 = vmul.f32 %v1806_v29, %v554_v28 }
 0x24b   :  { %v567_v56 = vmul.f32 %v1096_v31, %v557_v32  ;;  %v568_v38 = vmul.f32 %v1096_v31, %v558_v33  ;;  %v569_v63 = vmul.f32 %v1096_v31, %v559_v34  ;;  %v570_v40 = vmul.f32 %v1096_v31, %v560_v36 }
 0x24d   :  { %v577_v4 = vadd.f32 %v1097_v37, %v567_v56  ;;  %v578_v41 = vadd.f32 %v1097_v37, %v568_v38  ;;  %v579_v9 = vadd.f32 %v1097_v37, %v569_v63  ;;  %v580_v43 = vadd.f32 %v1097_v37, %v570_v40 }
 0x24f   :  { %v581_v44 = vmax.f32 %v577_v4, 0.0  ;;  %v582_v46 = vmax.f32 %v578_v41, 0.0  ;;  %v583_v47 = vmax.f32 %v579_v9, 0.0  ;;  %v584_v51 = vmax.f32 %v580_v43, 0.0 }
 0x251   :  { %v637_v52 = vrot.slane %v581_v44, 7  ;;  %725 = vmatprep.mubr.f32.mxu0 %v581_v44  ;;  %v649_v53 = vrot.slane %v581_v44, 1  ;;  %v650_v54 = vrot.slane %v582_v46, 1  ;;  %v652_v55 = vrot.slane %v583_v47, 1 }
 0x252   :  { %v653_v57 = vrot.slane %v584_v51, 1  ;;  %v638_v58 = vrot.slane %v582_v46, 7  ;;  %v640_v59 = vrot.slane %v583_v47, 7  ;;  %v641_v60 = vrot.slane %v584_v51, 7 }
 0x253   :  { %1099 = vmatmul.mubr.msk.f32.vlgmr.msra.gmra.mrb[12].mxu0 %vm2071_vm2, %v637_v52  ;;  %v651_v61 = vsel %vm170_vm0, %v649_v53, %v650_v54 }
 0x254   :  { %730 = vmatprep.mubr.f32.mxu0 %v582_v46  ;;  %1460 = vmatprep.mubr.f32.mxu1 %v651_v61  ;;  %v654_v62 = vsel %vm170_vm0, %v652_v55, %v653_v57  ;;  %v639_v0 = vsel %vm157_vm1, %v637_v52, %v638_v58  ;;  %v642_v1 = vsel %vm157_vm1, %v640_v59, %v641_v60 }
 0x255   :  { %1461 = vmatmul.mubr.msk.f32.vlgmr.msra.gmra.mrb[8].mxu1 %vm170_vm0, %v650_v54  ;;  %1737 = vmatpush3.bf16.msra.mxu0 %v2065_v17 }
 0x256   :  { %1463 = vmatprep.mubr.f32.mxu1 %v654_v62  ;;  %1769 = vmatpush3.bf16.msra.mxu1 %v2065_v17 }
 0x257   :  { %731 = vmatmul.mubr.f32.gmra.mrb[14].mxu0 %v639_v0  ;;  %1739 = vmatprep.subr.bf16.mxu0 %v2079_v26 }
 0x258   :  { %735 = vmatprep.mubr.f32.mxu0 %v583_v47  ;;  %1771 = vmatprep.subr.bf16.mxu1 %v2079_v26 }
 0x259   :  { %1464 = vmatmul.mubr.msk.f32.gmra.mrb[10].mxu1 %vm170_vm0, %v653_v57  ;;  %1741 = vmatpush3.bf16.msra.mxu0 %v2079_v26 }
 0x25a   :  { %1773 = vmatpush3.bf16.msra.mxu1 %v2079_v26  ;;  %1743 = vmatprep.subr.bf16.mxu0 %v2089_v30 }
 0x25b   :  { %1101 = vmatmul.mubr.msk.f32.gmra.mrb[16].mxu0 %vm2071_vm2, %v640_v59  ;;  %1775 = vmatprep.subr.bf16.mxu1 %v2089_v30 }
 0x25c   :  { %740 = vmatprep.mubr.f32.mxu0 %v584_v51 }
 0x25d   :  { %1745 = vmatpush3.bf16.msra.mxu0 %v2089_v30 }
 0x25e   :  { %1777 = vmatpush3.bf16.msra.mxu1 %v2089_v30  ;;  %1747 = vmatprep.subr.bf16.mxu0 %v2099_v35 }
 0x25f   :  { %741 = vmatmul.mubr.f32.gmra.mrb[18].mxu0 %v642_v1  ;;  %1779 = vmatprep.subr.bf16.mxu1 %v2099_v35 }
 0x261   :  { %1749 = vmatpush3.bf16.msra.mxu0 %v2099_v35 }
 0x262   :  { %1781 = vmatpush3.bf16.msra.mxu1 %v2099_v35  ;;  %1751 = vmatprep.subr.bf16.mxu0 %v2109_v39 }
 0x263   :  { %1783 = vmatprep.subr.bf16.mxu1 %v2109_v39 }
 0x265   :  { %1753 = vmatpush3.bf16.msra.mxu0 %v2109_v39 }
 0x266   :  { %1785 = vmatpush3.bf16.msra.mxu1 %v2109_v39  ;;  %1755 = vmatprep.subr.bf16.mxu0 %v2115_v42 }
 0x267   :  { %1787 = vmatprep.subr.bf16.mxu1 %v2115_v42 }
 0x269   :  { %1757 = vmatpush3.bf16.msra.mxu0 %v2115_v42 }
 0x26a   :  { %1789 = vmatpush3.bf16.msra.mxu1 %v2115_v42  ;;  %1759 = vmatprep.subr.bf16.mxu0 %v2124_v45 }
 0x26b   :  { %1791 = vmatprep.subr.bf16.mxu1 %v2124_v45 }
 0x26d   :  { %1761 = vmatpush3.bf16.msra.mxu0 %v2124_v45 }
 0x26e   :  { %1793 = vmatpush3.bf16.msra.mxu1 %v2124_v45  ;;  %1763 = vmatprep.subr.bf16.mxu0 %v2130_v48 }
 0x26f   :  { %1795 = vmatprep.subr.bf16.mxu1 %v2130_v48 }
 0x271   :  { %1765 = vmatpush3.bf16.msra.mxu0 %v2130_v48 }
 0x272   :  { %1797 = vmatpush3.bf16.msra.mxu1 %v2130_v48 }
 0x326   :  { %v1242_v17 = vpop.f32.mrb[12].mxu0 }
 0x327   :  { %v1243_v23 = vpop.f32.mrb[13].mxu0 }
 0x328   :  { %v1244_v26 = vadd.f32 %v1243_v23, %v1242_v17  ;;  %v1462_v30 = vpop.f32.mrb[8].mxu1  ;;  %v1104_v17 = vld [vmem:[%s2244_s5] ss:$0 sm:$0xff]  ;;  %s1897_s5 = scalar_lea.vmem %s1077_s16, 512 }
 0x329   :  { %v812_v35 = vpop.f32.mrb[9].mxu1  ;;  %p1898_p4 = scmp.ne.s32.totalorder %s1077_s16, %s1897_s5  ;;  %p1903_p6 = scmp.lt.s32.totalorder %s1897_s5, %s1897_s5 }
 0x32a   :  { %v2208_v39 = vadd.f32 %v1244_v26, %v812_v35  ;;  %v1245_v42 = vpop.f32.mrb[14].mxu0 }
 0x32b   :  { %v1246_v2 = vpop.f32.mrb[15].mxu0  ;;  %p1904_p7 = por %p1903_p6, %p1902_p5 }
 0x32c   :  { %v1247_v3 = vadd.f32 %v1246_v2, %v1245_v42  ;;  %v1465_v5 = vpop.f32.mrb[10].mxu1  ;;  %1498 = vmatprep.mubr.f32.mxu0 %v2208_v39  ;;  %v928_v45 = vmul.f32 %v2208_v39, %v2208_v39  ;;  %v1105_v42 = vld [vmem:[%s2245_s6] ss:$0 sm:$0xff] }
 0x32d   :  { %v822_v6 = vpop.f32.mrb[11].mxu1  ;;  %p1905_p8 = pnand %p1904_p7, %p1898_p4 }
 0x32e   :  { %v818_v7 = vadd.f32 %v1462_v30, %v1247_v3  ;;  %v1248_v8 = vpop.f32.mrb[16].mxu0  ;;  %1536 = vmatprep.mubr.f32.mxu1 %v928_v45 }
 0x32f   :  { %v1249_v48 = vpop.f32.mrb[17].mxu0 }
 0x330   :  { %v929_v10 = vmul.f32 %v818_v7, %v818_v7  ;;  %v1250_v11 = vadd.f32 %v1249_v48, %v1248_v8  ;;  %1499 = vmatmul.mubr.f32.vlgmr.msra.gmra.mrb[20].mxu0 %v818_v7 }
 0x332   :  { %v823_v12 = vadd.f32 %v1250_v11, %v822_v6  ;;  %v1251_v13 = vpop.f32.mrb[18].mxu0  ;;  %1537 = vmatmul.mubr.f32.vlgmr.msra.gmra.mrb[12].mxu1 %v929_v10 }
 0x333   :  { %v1252_v16 = vpop.f32.mrb[19].mxu0 }
 0x334   :  { %v1253_v18 = vadd.f32 %v1252_v16, %v1251_v13  ;;  %1501 = vmatprep.mubr.f32.mxu0 %v823_v12  ;;  %v930_v19 = vmul.f32 %v823_v12, %v823_v12 }
 0x336   :  { %v828_v20 = vadd.f32 %v1465_v5, %v1253_v18  ;;  %1539 = vmatprep.mubr.f32.mxu1 %v930_v19 }
 0x338   :  { %1502 = vmatmul.mubr.f32.gmra.mrb[22].mxu0 %v828_v20  ;;  %v931_v21 = vmul.f32 %v828_v20, %v828_v20 }
 0x33a   :  { %1540 = vmatmul.mubr.f32.gmra.mrb[14].mxu1 %v931_v21 }
 0x403   :  { %v1500_v22 = vpop.f32.mrb[20].mxu0 }
 0x404   :  { %v899_v24 = vpop.f32.mrb[21].mxu0 }
 0x405   :  { %v918_v25 = vadd.f32 %v1500_v22, %v899_v24  ;;  %v1538_v27 = vpop.f32.mrb[12].mxu1 }
 0x406   :  { %v998_v28 = vpop.f32.mrb[13].mxu1 }
 0x407   :  { %v1017_v29 = vadd.f32 %v1538_v27, %v998_v28 }
 0x40b   :  { %v1503_v31 = vpop.f32.mrb[22].mxu0 }
 0x40c   :  { %v909_v32 = vpop.f32.mrb[23].mxu0 }
 0x40d   :  { %v919_v33 = vadd.f32 %v918_v25, %v909_v32  ;;  %v1541_v34 = vpop.f32.mrb[14].mxu1 }
 0x40e   :  { %v1008_v36 = vpop.f32.mrb[15].mxu1 }
 0x40f   :  { %v920_v37 = vadd.f32 %v1503_v31, %v919_v33  ;;  %v1018_v56 = vadd.f32 %v1017_v29, %v1008_v36 }
 0x411   :  { %v921_v38 = vrot.slane %v920_v37, 4  ;;  %v1019_v63 = vadd.f32 %v1541_v34, %v1018_v56 }
 0x413   :  { %v922_v40 = vadd.f32 %v921_v38, %v920_v37  ;;  %v1020_v4 = vrot.slane %v1019_v63, 4 }
 0x415   :  { %v923_v41 = vrot.slane %v922_v40, 2  ;;  %v1021_v9 = vadd.f32 %v1020_v4, %v1019_v63 }
 0x417   :  { %v924_v43 = vadd.f32 %v923_v41, %v922_v40  ;;  %v1022_v44 = vrot.slane %v1021_v9, 2 }
 0x419   :  { %v925_v46 = vrot.slane %v924_v43, 1  ;;  %v1023_v47 = vadd.f32 %v1022_v44, %v1021_v9 }
 0x41b   :  { %v926_v51 = vadd.f32 %v925_v46, %v924_v43  ;;  %v1024_v52 = vrot.slane %v1023_v47, 1 }
 0x41d   :  { %v927_v53 = vmul.f32 0.001953125, %v926_v51  ;;  %v1025_v54 = vadd.f32 %v1024_v52, %v1023_v47 }
 0x41f   :  { %v1026_v55 = vmul.f32 0.001953125, %v1025_v54  ;;  %v1027_v57 = vmul.f32 %v927_v53, %v927_v53  ;;  %v1029_v60 = vsub.f32 %v2208_v39, %v927_v53  ;;  %v1030_v61 = vsub.f32 %v818_v7, %v927_v53 }
 0x420   :  { %v1031_v62 = vsub.f32 %v823_v12, %v927_v53  ;;  %v1032_v0 = vsub.f32 %v828_v20, %v927_v53 }
 0x421   :  { %v1028_v58 = vsub.f32 %v1026_v55, %v1027_v57 }
 0x423   :  { %v1033_v59 = vadd.f32 1e-05, %v1028_v58 }
 0x425   :  { %1807 = vrsqrt.f32 %v1033_v59 }
 0x42f   :  { %v1808_v1 = vpop.eup %1807 }
 0x430   :  { %v1035_v23 = vmul.f32 %v1808_v1, %v1029_v60  ;;  %v1036_v26 = vmul.f32 %v1808_v1, %v1030_v61  ;;  %v1037_v30 = vmul.f32 %v1808_v1, %v1031_v62  ;;  %v1038_v35 = vmul.f32 %v1808_v1, %v1032_v0 }
 0x432   :  { %v1045_v2 = vmul.f32 %v1104_v17, %v1035_v23  ;;  %v1046_v3 = vmul.f32 %v1104_v17, %v1036_v26  ;;  %v1047_v5 = vmul.f32 %v1104_v17, %v1037_v30  ;;  %v1048_v39 = vmul.f32 %v1104_v17, %v1038_v35 }
 0x434   :  { %v1055_v45 = vadd.f32 %v1105_v42, %v1045_v2  ;;  %v1056_v6 = vadd.f32 %v1105_v42, %v1046_v3  ;;  %v1057_v7 = vadd.f32 %v1105_v42, %v1047_v5  ;;  %v1058_v8 = vadd.f32 %v1105_v42, %v1048_v39 }
 0x436   :  { %v1059_v48 = vadd.f32 %v1055_v45, %v2053_v49  ;;  %v1060_v10 = vadd.f32 %v1056_v6, %v2055_v50  ;;  %v1061_v11 = vadd.f32 %v1057_v7, %v2061_v14  ;;  %v1062_v12 = vadd.f32 %v1058_v8, %v2063_v15 }
 0x438   :  { %v1063_v13 = vmax.f32 %v1059_v48, 0.0  ;;  %v1064_v16 = vmax.f32 %v1060_v10, 0.0  ;;  %v1065_v18 = vmax.f32 %v1061_v11, 0.0  ;;  %v1066_v19 = vmax.f32 %v1062_v12, 0.0 }
 0x43a   :  { %1067 = vst [vmem:[#allocation10] sm:$0xff] %v1063_v13  ;;  %1068 = vst [vmem:[#allocation10 + $0x8] sm:$0xff] %v1064_v16 }
 0x43b   :  { %1069 = vst [vmem:[#allocation10 + $0x10] sm:$0xff] %v1065_v18  ;;  %1070 = vst [vmem:[#allocation10 + $0x18] sm:$0xff] %v1066_v19 }
 0x43c   :  { %1908 = shalt.err (!%p1905_p8)
}
 0x43d   :  { %s1909_s20 = scalar_lea.hbm %s2247_s8, 512 }
 0x43e   :  { %p1910_p9 = scmp.ne.s32.totalorder %s2247_s8, %s1909_s20  ;;  %p1913_p10 = scmp.lt.u32.totalorder %s1909_s20, %s2247_s8 }
 0x440   :  { %p1915_p11 = pnand %p1913_p10, %p1910_p9 }
 0x442   :  { %1918 = shalt.err (!%p1915_p11)
}
 0x443   :  { %1082 = dma.vmem_to_hbm [thread:$0]  %s1077_s16, 512, %s2247_s8, [#allocation4], %s1929_s17, %s1929_s17, %s1930_s18  }
 0x444   :  { %1925 = dma.done.wait [#allocation4], 512  }
 0x445   :  { %1926 = vsyncadd [#allocation4], 4294966784 }
 0x446   :  { %1086 = vsyncpa [#allocation3], 1 }
 0x447   :  { %1087 = vsyncpa [#allocation6], 1 }
 0x448   :  { %1088 = vsyncpa [#allocation9], 1 }
 0x449   :  { %1089 = vsyncpa [#allocation4], 1 }

</bundles_post_ra>
